<compile_context>
chip_gen: v5e
topology: v5e:2x2
jax: 0.10.0
libtpu: 0.0.40
codegen_flags: <defaults>
</compile_context>

<pallas_src>
import math

import jax
import jax.numpy as jnp
from jax.experimental import pallas as pl
from jax.experimental.pallas import tpu as pltpu
from typing import NamedTuple


# ---------------------------------------------------------------------------
# helpers
# ---------------------------------------------------------------------------

def _round_up(x, m):
    return (x + m - 1) // m * m


def _vmem_capacity_bytes():
    """Physical VMEM per TensorCore; falls back to the smallest (v7x) size."""
    try:
        info = pltpu.get_tpu_info()
        cap = int(getattr(info, "vmem_capacity_bytes", 0) or 0)
        if cap > 0:
            return cap
    except Exception:
        pass
    return 64 * 1024 * 1024


def _vmem_limit_and_budget():
    cap = _vmem_capacity_bytes()
    # ~80% of physical as the compiler scoped-VMEM limit (≈51 MiB on v7x,
    # ≈102 MiB on v5e/v6e), and ~75% of that as the tiling budget so Mosaic
    # internal scratch / f32 temporaries have headroom.
    vmem_limit = int(max(32 * 1024 * 1024, min(cap * 0.8, 112 * 1024 * 1024)))
    budget = int(vmem_limit * 0.75)
    return vmem_limit, budget


def _choose_tv(d_model, vocab, budget):
    """Vocab (lane) tile: large (1024) for few grid steps, multiple of 128."""
    vocab128 = _round_up(vocab, 128)
    tv = min(1024, vocab128)
    # keep the double-buffered bf16 weight tile within ~1/3 of the budget
    while tv > 256 and 2 * d_model * tv * 2 > budget // 3:
        tv = max(128, _round_up(tv // 2, 128))
    return tv


def _choose_tm(n, d_model, tv, logits_itemsize, budget):
    """Row (M) tile derived from the VMEM budget (no resident slab anymore)."""
    # fixed (tm-independent) VMEM: double-buffered weight + bias tiles + slack
    fixed = 2 * d_model * tv * 2 + 2 * tv * 4 + (1 << 20)
    # per-row VMEM: double-buffered bf16 x tile, double-buffered logits out tile,
    # f32 temporaries for one logits tile, m/l scratch.
    per_row = 2 * d_model * 2 + 2 * tv * logits_itemsize + 2 * tv * 4 + 64
    tm_hw = ((budget - fixed) // per_row // 128) * 128
    tm_hw = max(128, min(1024, tm_hw))

    n16 = _round_up(max(n, 1), 16)
    tm = min(tm_hw, n16)
    # megacore: when there is enough work, make >= 2 row tiles so the
    # "parallel" row axis can shard across both TensorCores (v7x).
    if n16 > 256 and tm >= n16:
        tm = _round_up((n16 + 1) // 2, 128)
    tm = max(16, _round_up(tm, 16))
    n_pad = _round_up(n16, tm)
    return tm, n_pad


# ---------------------------------------------------------------------------
# kernels
# ---------------------------------------------------------------------------

def _logits_lse_kernel(x_ref, w_ref, b_ref, logits_ref, lse_ref, m_ref, l_ref):
    # x_ref:      (tm, d_model) bf16              w_ref: (d_model, tv) bf16
    # b_ref:      (1, tv) f32
    # logits_ref: (tm, tv)  raw-logit output tile (streamed every step)
    # lse_ref:    (tm, 1) f32 (resident over j, written on the last vocab step)
    # m_ref, l_ref: (tm, 1) f32 scratch (running max / running sum of exp)
    j = pl.program_id(1)
    nv = pl.num_programs(1)

    @pl.when(j == 0)
    def _init():
        m_ref[...] = jnp.full(m_ref.shape, -jnp.inf, dtype=m_ref.dtype)
        l_ref[...] = jnp.zeros(l_ref.shape, dtype=l_ref.dtype)

    # bf16 x bf16 -> f32 accumulation on the MXU; bias add in f32.
    logits = jnp.dot(x_ref[...], w_ref[...], preferred_element_type=jnp.float32)
    logits = logits + b_ref[...]

    # Online (flash-style) max / sum-exp update.
    m_prev = m_ref[...]
    m_new = jnp.maximum(m_prev, jnp.max(logits, axis=-1, keepdims=True))
    l_ref[...] = (l_ref[...] * jnp.exp(m_prev - m_new)
                  + jnp.sum(jnp.exp(logits - m_new), axis=-1, keepdims=True))
    m_ref[...] = m_new

    # One lane-dense, unmasked store per step (no resident slab, no unrolled
    # predicated stores).
    logits_ref[...] = logits.astype(logits_ref.dtype)

    @pl.when(j == nv - 1)
    def _finalize():
        lse_ref[...] = m_ref[...] + jnp.log(l_ref[...])


def _normalize_kernel(logits_ref, lse_ref, o_ref):
    # log_softmax = raw_logits - logsumexp   (cheap streaming elementwise pass)
    o_ref[...] = (logits_ref[...].astype(jnp.float32)
                  - lse_ref[...]).astype(o_ref.dtype)


# ---------------------------------------------------------------------------
# wrapper
# ---------------------------------------------------------------------------

class GeneratorParams(NamedTuple):
    w: jax.Array        # (d_model, vocab_pad) bf16, padded once at init
    b: jax.Array        # (1, vocab_pad) f32, padded columns = -1e30
    d_model: int
    vocab: int
    vocab_pad: int
    tv: int


def prepare_generator_params(w, b, *, tv=None):
    """One-time prep: w is the PyTorch Linear weight (vocab, d_model), b is (vocab,).

    Casting to bf16 and padding the vocab axis happen here, NOT per forward call.
    """
    vocab, d_model = w.shape
    _, budget = _vmem_limit_and_budget()
    if tv is None:
        tv = _choose_tv(d_model, vocab, budget)
    assert tv % 128 == 0, "tv must be a multiple of 128 (lane width)"
    vocab_pad = _round_up(vocab, tv)

    w_t = jnp.asarray(w).T.astype(jnp.bfloat16)          # (d_model, vocab)
    b_f = jnp.asarray(b).astype(jnp.float32)
    if vocab_pad != vocab:
        w_t = jnp.pad(w_t, ((0, 0), (0, vocab_pad - vocab)))
        # Huge negative bias on padded columns -> exp() of them is exactly 0.
        b_f = jnp.pad(b_f, (0, vocab_pad - vocab), constant_values=-1e30)
    return GeneratorParams(w_t, b_f.reshape(1, vocab_pad),
                           int(d_model), int(vocab), int(vocab_pad), int(tv))


def generator_forward(x, params, *, out_dtype=None, logits_dtype=jnp.float32):
    """log_softmax(x @ W^T + b, axis=-1) with pre-prepared params."""
    d_model, vocab, vocab_pad, tv = (params.d_model, params.vocab,
                                     params.vocab_pad, params.tv)
    assert x.shape[-1] == d_model
    lead = x.shape[:-1]
    out_dtype = x.dtype if out_dtype is None else out_dtype

    n = 1
    for s in lead:
        n *= s

    vmem_limit, budget = _vmem_limit_and_budget()
    logits_itemsize = jnp.dtype(logits_dtype).itemsize
    tm, n_pad = _choose_tm(n, d_model, tv, logits_itemsize, budget)

    x2 = x.reshape(n, d_model).astype(jnp.bfloat16)
    if n_pad != n:
        x2 = jnp.pad(x2, ((0, n_pad - n), (0, 0)))

    grid = (n_pad // tm, vocab_pad // tv)

    # ---- pass 1: raw logits (streamed) + per-row logsumexp ----
    logits, lse = pl.pallas_call(
        _logits_lse_kernel,
        out_shape=(jax.ShapeDtypeStruct((n_pad, vocab_pad), logits_dtype),
                   jax.ShapeDtypeStruct((n_pad, 1), jnp.float32)),
        grid_spec=pltpu.PrefetchScalarGridSpec(
            num_scalar_prefetch=0,
            grid=grid,
            in_specs=[
                # x row tile: resident across the vocab axis.
                pl.BlockSpec((tm, d_model), lambda i, j: (i, 0)),
                # weight vocab tile: streams (double-buffered) along j.
                pl.BlockSpec((d_model, tv), lambda i, j: (0, j)),
                # bias vocab tile (tiny).
                pl.BlockSpec((1, tv), lambda i, j: (0, j)),
            ],
            out_specs=[
                pl.BlockSpec((tm, tv), lambda i, j: (i, j)),   # raw logits
                pl.BlockSpec((tm, 1), lambda i, j: (i, 0)),    # logsumexp
            ],
            scratch_shapes=[
                pltpu.VMEM((tm, 1), jnp.float32),   # running max
                pltpu.VMEM((tm, 1), jnp.float32),   # running sum(exp)
            ],
        ),
        compiler_params=pltpu.CompilerParams(
            dimension_semantics=("parallel", "arbitrary"),
            vmem_limit_bytes=vmem_limit,
        ),
    )(x2, params.w, params.b)

    # ---- pass 2: subtract the per-row logsumexp (memory-bound elementwise) ----
    out = pl.pallas_call(
        _normalize_kernel,
        out_shape=jax.ShapeDtypeStruct((n_pad, vocab_pad), out_dtype),
        grid_spec=pltpu.PrefetchScalarGridSpec(
            num_scalar_prefetch=0,
            grid=grid,
            in_specs=[
                pl.BlockSpec((tm, tv), lambda i, j: (i, j)),
                pl.BlockSpec((tm, 1), lambda i, j: (i, 0)),
            ],
            out_specs=pl.BlockSpec((tm, tv), lambda i, j: (i, j)),
        ),
        compiler_params=pltpu.CompilerParams(
            dimension_semantics=("parallel", "parallel"),
            vmem_limit_bytes=vmem_limit,
        ),
    )(logits, lse)

    return out[:n, :vocab].reshape(*lead, vocab)


# ---------------------------------------------------------------------------
# self-test
# ---------------------------------------------------------------------------

if __name__ == "__main__":
    # Small shapes consistent with the module: exercises row padding (n = 18),
    # vocab padding (1000 -> 1024 with -1e30 masked columns) and, with tv=256,
    # the multi-tile online max / sum-exp reduction across grid steps.
    batch, seq, d_model, vocab = 2, 9, 32, 1000

    key = jax.random.PRNGKey(0)
    kx, kw, kb = jax.random.split(key, 3)

    # Deterministic init mimicking nn.Linear default: U(-1/sqrt(d_model), +)
    bound = 1.0 / math.sqrt(d_model)
    w = jax.random.uniform(kw, (vocab, d_model), jnp.float32, -bound, bound)  # (out, in)
    b = jax.random.uniform(kb, (vocab,), jnp.float32, -bound, bound)
    x = jax.random.normal(kx, (batch, seq, d_model), jnp.float32)

    # Reference with matched bf16 matmul inputs (kernel uses bf16 MXU inputs,
    # f32 accumulation) and f32 log_softmax.
    xb = x.astype(jnp.bfloat16).astype(jnp.float32).reshape(-1, d_model)
    wb = w.T.astype(jnp.bfloat16).astype(jnp.float32)
    logits_ref = jnp.dot(xb, wb, precision=jax.lax.Precision.HIGHEST) + b
    ref = jax.nn.log_softmax(logits_ref, axis=-1).reshape(batch, seq, vocab)

    # 1) default config (tv auto -> 1024 here: single vocab tile, padded tail)
    params = prepare_generator_params(w, b)
    out = jax.block_until_ready(generator_forward(x, params))
    assert out.shape == (batch, seq, vocab)
    err = float(jnp.max(jnp.abs(out - ref)))
    assert jnp.allclose(out, ref, atol=2e-3, rtol=2e-3), f"max abs err = {err}"

    # 2) multi-tile vocab config (tv=256 -> 4 vocab tiles): exercises the online
    #    running-max / sum-exp reduction across the "arbitrary" grid axis.
    params_small_tv = prepare_generator_params(w, b, tv=256)
    out2 = jax.block_until_ready(generator_forward(x, params_small_tv))
    err2 = float(jnp.max(jnp.abs(out2 - ref)))
    assert jnp.allclose(out2, ref, atol=2e-3, rtol=2e-3), f"max abs err = {err2}"

    print("KERNEL_OK")
</pallas_src>

<mosaic_0001>
module attributes {stable_mosaic.version = 11 : i64} {
  func.func @_logits_lse_kernel(%arg0: i32, %arg1: i32, %arg2: memref<32x32xbf16, #tpu.memory_space<vmem>>, %arg3: memref<32x1024xbf16, #tpu.memory_space<vmem>>, %arg4: memref<1x1024xf32, #tpu.memory_space<vmem>>, %arg5: memref<32x1024xf32, #tpu.memory_space<vmem>>, %arg6: memref<32x1xf32, #tpu.memory_space<vmem>>, %arg7: memref<32x1xf32, #tpu.memory_space<vmem>>, %arg8: memref<32x1xf32, #tpu.memory_space<vmem>>) attributes {dimension_semantics = [#tpu.dimension_semantics<parallel>, #tpu.dimension_semantics<arbitrary>], iteration_bounds = array<i64: 1, 1>, scalar_prefetch = 0 : i64, scratch_operands = 2 : i64, tpu.core_type = #tpu.core_type<tc>, window_params = [{transform_indices = @transform_0, window_bounds = array<i64: 32, 32>}, {transform_indices = @transform_1, window_bounds = array<i64: 32, 1024>}, {transform_indices = @transform_2, window_bounds = array<i64: 1, 1024>}, {transform_indices = @transform_3, window_bounds = array<i64: 32, 1024>}, {transform_indices = @transform_4, window_bounds = array<i64: 32, 1>}]} {
    %c0_i32 = arith.constant 0 : i32
    %0 = arith.cmpi eq, %arg1, %c0_i32 : i32
    %1 = arith.extui %0 : i1 to i32
    %c0_i32_0 = arith.constant 0 : i32
    %2 = arith.cmpi ne, %1, %c0_i32_0 : i32
    scf.if %2 {
      %cst_20 = arith.constant 0xFF800000 : f32
      %29 = vector.broadcast %cst_20 : f32 to vector<32x1xf32>
      %c0_21 = arith.constant 0 : index
      %c0_22 = arith.constant 0 : index
      %30 = vector.load %arg7[%c0_21, %c0_22] : memref<32x1xf32, #tpu.memory_space<vmem>>, vector<32x1xf32>
      tpu.vector_store %arg7[%c0_21, %c0_22], %29 {strides = array<i32>} : memref<32x1xf32, #tpu.memory_space<vmem>>, vector<32x1xf32>,
      %cst_23 = arith.constant 0.000000e+00 : f32
      %31 = vector.broadcast %cst_23 : f32 to vector<32x1xf32>
      %c0_24 = arith.constant 0 : index
      %c0_25 = arith.constant 0 : index
      %32 = vector.load %arg8[%c0_24, %c0_25] : memref<32x1xf32, #tpu.memory_space<vmem>>, vector<32x1xf32>
      tpu.vector_store %arg8[%c0_24, %c0_25], %31 {strides = array<i32>} : memref<32x1xf32, #tpu.memory_space<vmem>>, vector<32x1xf32>,
    } else {
    }
    %c0 = arith.constant 0 : index
    %c0_1 = arith.constant 0 : index
    %3 = vector.load %arg2[%c0, %c0_1] : memref<32x32xbf16, #tpu.memory_space<vmem>>, vector<32x32xbf16>
    %c0_2 = arith.constant 0 : index
    %c0_3 = arith.constant 0 : index
    %4 = vector.load %arg3[%c0_2, %c0_3] : memref<32x1024xbf16, #tpu.memory_space<vmem>>, vector<32x1024xbf16>
    %cst = arith.constant dense<0.000000e+00> : vector<32x1024xf32>
    %5 = tpu.matmul %3, %4, %cst {dimension_numbers = #tpu.dot_dimension_numbers<[1], [0], [0], [1], [0, 0, 1, 1], [], []>} : vector<32x32xbf16>, vector<32x1024xbf16>, vector<32x1024xf32> -> vector<32x1024xf32>
    %c0_4 = arith.constant 0 : index
    %c0_5 = arith.constant 0 : index
    %6 = vector.load %arg4[%c0_4, %c0_5] : memref<1x1024xf32, #tpu.memory_space<vmem>>, vector<1x1024xf32>
    %7 = vector.broadcast %6 : vector<1x1024xf32> to vector<32x1024xf32>
    %8 = arith.addf %5, %7 : vector<32x1024xf32>
    %c0_6 = arith.constant 0 : index
    %c0_7 = arith.constant 0 : index
    %9 = vector.load %arg7[%c0_6, %c0_7] : memref<32x1xf32, #tpu.memory_space<vmem>>, vector<32x1xf32>
    %cst_8 = arith.constant dense<0xFF800000> : vector<32xf32>
    %10 = vector.multi_reduction <maximumf>, %8, %cst_8 [1] : vector<32x1024xf32> to vector<32xf32>
    %11 = vector.shape_cast %10 : vector<32xf32> to vector<32x1xf32>
    %12 = arith.maximumf %9, %11 : vector<32x1xf32>
    %c0_9 = arith.constant 0 : index
    %c0_10 = arith.constant 0 : index
    %13 = vector.load %arg8[%c0_9, %c0_10] : memref<32x1xf32, #tpu.memory_space<vmem>>, vector<32x1xf32>
    %14 = arith.subf %9, %12 : vector<32x1xf32>
    %15 = math.exp %14 : vector<32x1xf32>
    %16 = arith.mulf %13, %15 : vector<32x1xf32>
    %17 = vector.broadcast %12 : vector<32x1xf32> to vector<32x1024xf32>
    %18 = arith.subf %8, %17 : vector<32x1024xf32>
    %19 = math.exp %18 : vector<32x1024xf32>
    %cst_11 = arith.constant dense<0.000000e+00> : vector<32xf32>
    %20 = vector.multi_reduction <add>, %19, %cst_11 [1] : vector<32x1024xf32> to vector<32xf32>
    %21 = vector.shape_cast %20 : vector<32xf32> to vector<32x1xf32>
    %22 = arith.addf %16, %21 : vector<32x1xf32>
    %c0_12 = arith.constant 0 : index
    %c0_13 = arith.constant 0 : index
    %23 = vector.load %arg8[%c0_12, %c0_13] : memref<32x1xf32, #tpu.memory_space<vmem>>, vector<32x1xf32>
    tpu.vector_store %arg8[%c0_12, %c0_13], %22 {strides = array<i32>} : memref<32x1xf32, #tpu.memory_space<vmem>>, vector<32x1xf32>,
    %c0_14 = arith.constant 0 : index
    %c0_15 = arith.constant 0 : index
    %24 = vector.load %arg7[%c0_14, %c0_15] : memref<32x1xf32, #tpu.memory_space<vmem>>, vector<32x1xf32>
    tpu.vector_store %arg7[%c0_14, %c0_15], %12 {strides = array<i32>} : memref<32x1xf32, #tpu.memory_space<vmem>>, vector<32x1xf32>,
    %c0_16 = arith.constant 0 : index
    %c0_17 = arith.constant 0 : index
    %25 = vector.load %arg5[%c0_16, %c0_17] : memref<32x1024xf32, #tpu.memory_space<vmem>>, vector<32x1024xf32>
    tpu.vector_store %arg5[%c0_16, %c0_17], %8 {strides = array<i32>} : memref<32x1024xf32, #tpu.memory_space<vmem>>, vector<32x1024xf32>,
    %c0_i32_18 = arith.constant 0 : i32
    %26 = arith.cmpi eq, %arg1, %c0_i32_18 : i32
    %27 = arith.extui %26 : i1 to i32
    %c0_i32_19 = arith.constant 0 : i32
    %28 = arith.cmpi ne, %27, %c0_i32_19 : i32
    scf.if %28 {
      %c0_20 = arith.constant 0 : index
      %c0_21 = arith.constant 0 : index
      %29 = vector.load %arg7[%c0_20, %c0_21] : memref<32x1xf32, #tpu.memory_space<vmem>>, vector<32x1xf32>
      %c0_22 = arith.constant 0 : index
      %c0_23 = arith.constant 0 : index
      %30 = vector.load %arg8[%c0_22, %c0_23] : memref<32x1xf32, #tpu.memory_space<vmem>>, vector<32x1xf32>
      %31 = math.log %30 : vector<32x1xf32>
      %32 = arith.addf %29, %31 : vector<32x1xf32>
      %c0_24 = arith.constant 0 : index
      %c0_25 = arith.constant 0 : index
      %33 = vector.load %arg6[%c0_24, %c0_25] : memref<32x1xf32, #tpu.memory_space<vmem>>, vector<32x1xf32>
      tpu.vector_store %arg6[%c0_24, %c0_25], %32 {strides = array<i32>} : memref<32x1xf32, #tpu.memory_space<vmem>>, vector<32x1xf32>,
    } else {
    }
    return
  }
  func.func @transform_0(%arg0: i32, %arg1: i32) -> (i32, i32) {
    %c0_i32 = arith.constant 0 : i32
    %c0_i32_0 = arith.constant 0 : i32
    return %arg0, %c0_i32 : i32, i32
  }
  func.func @transform_1(%arg0: i32, %arg1: i32) -> (i32, i32) {
    %c0_i32 = arith.constant 0 : i32
    %c0_i32_0 = arith.constant 0 : i32
    return %c0_i32, %arg1 : i32, i32
  }
  func.func @transform_2(%arg0: i32, %arg1: i32) -> (i32, i32) {
    %c0_i32 = arith.constant 0 : i32
    %c0_i32_0 = arith.constant 0 : i32
    return %c0_i32, %arg1 : i32, i32
  }
  func.func @transform_3(%arg0: i32, %arg1: i32) -> (i32, i32) {
    %c0_i32 = arith.constant 0 : i32
    return %arg0, %arg1 : i32, i32
  }
  func.func @transform_4(%arg0: i32, %arg1: i32) -> (i32, i32) {
    %c0_i32 = arith.constant 0 : i32
    %c0_i32_0 = arith.constant 0 : i32
    return %arg0, %c0_i32 : i32, i32
  }
}

</mosaic_0001>

<bundles_post_ra>
// kernel: tpu_custom_call.1
= control target key start
LH: loop header
LB: loop body
LE: loop exit
PB: predicated region body
PF: predicated region fallthrough
CT: control target
= control target key end

     0   :  { %10 = vsyncpa [#allocation5], 0  ;;  %s1320_s0 = inlined_call_operand.hbm [shape: bf16[32,32], index: 0, kind: input, shape index: {}]   ;;  %s1321_s1 = inlined_call_operand.hbm [shape: bf16[32,1024], index: 1, kind: input, shape index: {}]   ;;  %s1322_s2 = inlined_call_operand.hbm [shape: f32[1,1024], index: 2, kind: input, shape index: {}]   ;;  %s1323_s3 = inlined_call_operand.hbm [shape: f32[32,1024], index: 3, kind: output, shape index: {0}]   ;;  %s1324_s4 = inlined_call_operand.vmem [shape: f32[32,1], index: 4, kind: output, shape index: {1}]  }
   0x1   :  { %11 = vsyncpa [#allocation8], 0  ;;  %s30_s17 = sshll.u32 %s1321_s1, 4  ;;  %s31_s17 = int_to_ptr.hbm [resolvable:$true] %s30_s17 }
   0x2   :  { %12 = vsyncpa [#allocation6], 0  ;;  %s978_s18 = smov [#allocation7]   ;;  %s17_s22 = sshll.u32 %s1320_s0, 4  ;;  %s18_s22 = int_to_ptr.hbm [resolvable:$true] %s17_s22 }
   0x3   :  { %s32_s19 = sshll.u32 %s978_s18, 4  ;;  %s979_s23 = smov 512   ;;  %s33_s19 = int_to_ptr.vmem [resolvable:$true] %s32_s19 }
   0x4   :  { %s980_s24 = smov 32   ;;  %s981_s25 = smov [#allocation4]  }
   0x5   :  { %38 = dma.hbm_to_vmem [thread:$0]  %s31_s17, 2048, %s33_s19, [#allocation8], %s979_s23, %s979_s23, %s980_s24  }
   0x6   :  { %s19_s26 = sshll.u32 %s981_s25, 4  ;;  %s982_s27 = smov 64   ;;  %s20_s26 = int_to_ptr.vmem [resolvable:$true] %s19_s26 }
   0x7   :  { %s983_s28 = smov 4   ;;  %s44_s30 = sshll.u32 %s1322_s2, 4  ;;  %s45_s30 = int_to_ptr.hbm [resolvable:$true] %s44_s30 }
   0x8   :  { %25 = dma.hbm_to_vmem [thread:$0]  %s18_s22, 256, %s20_s26, [#allocation5], %s982_s27, %s982_s27, %s983_s28  }
   0x9   :  { %s984_s5 = smov [#allocation9]  }
   0xa   :  { %s46_s6 = sshll.u32 %s984_s5, 4  ;;  %s47_s6 = int_to_ptr.vmem [resolvable:$true] %s46_s6 }
   0xb   :  { %49 = dma.hbm_to_vmem [thread:$0]  %s45_s30, 128, %s47_s6, [#allocation8]  }
   0xc   :  { %972 = dma.done.wait [#allocation5], 256  }
   0xd   :  { %973 = vsyncadd [#allocation5], 4294967040 }
   0xe   :  { %974 = dma.done.wait [#allocation8], 2176  }
   0xf   :  { %975 = vsyncadd [#allocation8], 4294965120  ;;  %v717_v0 = vld [vmem:[#allocation7 + $0x40] sm:$0xf]  ;;  %v773_v2 = vld [vmem:[#allocation7 + $0x44] sm:$0xf] }
  0x10   :  { %v777_v1 = vld [vmem:[#allocation7 + $0x5c] sm:$0xf0]  ;;  %v719_v4 = vld [vmem:[#allocation7 + $0x60] sm:$0xf0]  ;;  %v725_v5 = vld [vmem:[#allocation7 + $0x48] sm:$0xf] }
  0x11   :  { %v718_v3 = vor.u32 %v777_v1, %v717_v0  ;;  %v778_v6 = vld [vmem:[#allocation7 + $0x64] sm:$0xf0]  ;;  %v722_v7 = vor.u32 %v773_v2, %v719_v4  ;;  %v774_v9 = vld [vmem:[#allocation7 + $0x4c] sm:$0xf]  ;;  %v685_v11 = vld [vmem:[#allocation7] sm:$0xf] }
  0x12   :  { %v726_v8 = vor.u32 %v778_v6, %v725_v5  ;;  %v727_v10 = vld [vmem:[#allocation7 + $0x68] sm:$0xf0]  ;;  %v769_v13 = vld [vmem:[#allocation7 + $0x1c] sm:$0xf0]  ;;  %v765_v14 = vld [vmem:[#allocation7 + $0x4] sm:$0xf] }
  0x13   :  { %217 = vmatpush.bf16.msra.mxu0 %v718_v3  ;;  %v730_v12 = vor.u32 %v774_v9, %v727_v10  ;;  %v687_v15 = vld [vmem:[#allocation7 + $0x20] sm:$0xf0]  ;;  %236 = vmatpush.bf16.msra.mxu1 %v722_v7  ;;  %v686_v16 = vor.u32 %v769_v13, %v685_v11  ;;  %v693_v18 = vld [vmem:[#allocation7 + $0x8] sm:$0xf]  ;;  %v766_v20 = vld [vmem:[#allocation7 + $0xc] sm:$0xf] }
  0x14   :  { %255 = vmatpush.bf16.msra.mxu2 %v726_v8  ;;  %v690_v17 = vor.u32 %v765_v14, %v687_v15  ;;  %v770_v19 = vld [vmem:[#allocation7 + $0x24] sm:$0xf0]  ;;  %v695_v22 = vld [vmem:[#allocation7 + $0x28] sm:$0xf0]  ;;  %v763_v23 = vld [vmem:[#allocation4] sm:$0xff]  ;;  %vm204_vm0 = vcmask 261120  }
  0x15   :  { %274 = vmatpush.bf16.msra.mxu3 %v730_v12  ;;  %v694_v21 = vor.u32 %v770_v19, %v693_v18  ;;  %v741_v24 = vld [vmem:[#allocation7 + $0x58] sm:$0xf]  ;;  %v698_v25 = vor.u32 %v766_v20, %v695_v22  ;;  %v733_v27 = vld [vmem:[#allocation7 + $0x50] sm:$0xf]  ;;  %v776_v30 = vld [vmem:[#allocation7 + $0x5c] sm:$0xf] }
  0x16   :  { %v780_v26 = vld [vmem:[#allocation7 + $0x74] sm:$0xf0]  ;;  %v779_v28 = vld [vmem:[#allocation7 + $0x6c] sm:$0xf0]  ;;  %v743_v31 = vld [vmem:[#allocation7 + $0x78] sm:$0xf0] }
  0x17   :  { %218 = vmatpush.bf16.msra.mxu0 %v686_v16  ;;  %v742_v29 = vor.u32 %v780_v26, %v741_v24  ;;  %v775_v32 = vld [vmem:[#allocation7 + $0x54] sm:$0xf]  ;;  %237 = vmatpush.bf16.msra.mxu1 %v690_v17  ;;  %v734_v33 = vor.u32 %v779_v28, %v733_v27  ;;  %v746_v34 = vor.u32 %v776_v30, %v743_v31  ;;  %v709_v36 = vld [vmem:[#allocation7 + $0x18] sm:$0xf]  ;;  %v701_v39 = vld [vmem:[#allocation7 + $0x10] sm:$0xf] }
  0x18   :  { %256 = vmatpush.bf16.msra.mxu2 %v694_v21  ;;  %v735_v35 = vld [vmem:[#allocation7 + $0x70] sm:$0xf0]  ;;  %v772_v38 = vld [vmem:[#allocation7 + $0x34] sm:$0xf0]  ;;  %v771_v40 = vld [vmem:[#allocation7 + $0x2c] sm:$0xf0] }
  0x19   :  { %275 = vmatpush.bf16.msra.mxu3 %v698_v25  ;;  %v738_v37 = vor.u32 %v775_v32, %v735_v35  ;;  %v710_v41 = vor.u32 %v772_v38, %v709_v36  ;;  %v768_v42 = vld [vmem:[#allocation7 + $0x1c] sm:$0xf]  ;;  %v767_v44 = vld [vmem:[#allocation7 + $0x14] sm:$0xf]  ;;  %v702_v47 = vor.u32 %v771_v40, %v701_v39  ;;  %v1042_v50 = vld [vmem:[#allocation9] sm:$0xff]  ;;  %vm67_vm1 = vcmask 7168  }
  0x1a   :  { %747 = vmatmul.msk.bf16.vlgmr.msra.gmra.mxu0 %vm204_vm0, %v763_v23  ;;  %v711_v43 = vld [vmem:[#allocation7 + $0x38] sm:$0xf0]  ;;  %749 = vmatmul.msk.bf16.vlgmr.msra.gmra.mxu1 %vm204_vm0, %v763_v23  ;;  %v703_v46 = vld [vmem:[#allocation7 + $0x30] sm:$0xf0]  ;;  %v98_v51 = vperm.slane %v1042_v50, 0  ;;  %v99_v52 = vperm.slane %v1042_v50, 1 }
  0x1b   :  { %751 = vmatmul.msk.bf16.vlgmr.msra.gmra.mxu2 %vm204_vm0, %v763_v23  ;;  %v714_v45 = vor.u32 %v768_v42, %v711_v43  ;;  %293 = vmatpush.bf16.msrb.mxu0 %v734_v33  ;;  %v706_v48 = vor.u32 %v767_v44, %v703_v46  ;;  %v764_v49 = vld [vmem:[#allocation4 + $0x8] sm:$0xff]  ;;  %v100_v57 = vperm.slane %v1042_v50, 2  ;;  %v101_v58 = vperm.slane %v1042_v50, 3  ;;  %s657_s7 = sshll.u32 %s1323_s3, 4  ;;  %s988_s8 = smov [#allocation10]   ;;  %s658_s7 = int_to_ptr.hbm [resolvable:$true] %s657_s7 }
  0x1c   :  { %331 = vmatpush.bf16.msrb.mxu2 %v742_v29  ;;  %753 = vmatmul.msk.bf16.vlgmr.msra.gmra.mxu3 %vm204_vm0, %v763_v23  ;;  %v1093_v20 = vperm.slane %v1042_v50, 4  ;;  %v1121_v35 = vperm.slane %v1042_v50, 7  ;;  %v985_v38 = vmov -inf   ;;  %s655_s9 = sshll.u32 %s988_s8, 4  ;;  %s989_s10 = smov 1024   ;;  %s656_s9 = int_to_ptr.vmem [resolvable:$true] %s655_s9 }
  0x1d   :  { %350 = vmatpush.bf16.msrb.mxu3 %v746_v34  ;;  %312 = vmatpush.bf16.msrb.mxu1 %v738_v37  ;;  %v1117_v34 = vperm.slane %v1042_v50, 6  ;;  %68 = vst.msk [vmem:[#allocation2] sm:$0xff] %vm67_vm1, %v985_v38 }
  0x1e   :  { %69 = vst.msk [vmem:[#allocation2 + $0x8] sm:$0xff] %vm67_vm1, %v985_v38 }
  0x1f   :  { %294 = vmatpush.bf16.msrb.mxu0 %v702_v47  ;;  %70 = vst.msk [vmem:[#allocation2 + $0x10] sm:$0xff] %vm67_vm1, %v985_v38 }
  0x20   :  { %332 = vmatpush.bf16.msrb.mxu2 %v710_v41  ;;  %71 = vst.msk [vmem:[#allocation2 + $0x18] sm:$0xff] %vm67_vm1, %v985_v38 }
  0x21   :  { %351 = vmatpush.bf16.msrb.mxu3 %v714_v45  ;;  %313 = vmatpush.bf16.msrb.mxu1 %v706_v48 }
  0x2a   :  { %748 = vmatmul.msk.bf16.gmra.mxu0 %vm204_vm0, %v764_v49  ;;  %750 = vmatmul.msk.bf16.gmra.mxu1 %vm204_vm0, %v764_v49 }
  0x2b   :  { %752 = vmatmul.msk.bf16.gmra.mxu2 %vm204_vm0, %v764_v49 }
  0x2c   :  { %754 = vmatmul.msk.bf16.gmra.mxu3 %vm204_vm0, %v764_v49 }
  0x3a   :  { %755 = vmatmul.msk.bf16.vlgmr.msrb.gmra.mxu0 %vm204_vm0, %v763_v23  ;;  %757 = vmatmul.msk.bf16.vlgmr.msrb.gmra.mxu1 %vm204_vm0, %v763_v23 }
  0x3b   :  { %759 = vmatmul.msk.bf16.vlgmr.msrb.gmra.mxu2 %vm204_vm0, %v763_v23 }
  0x3c   :  { %761 = vmatmul.msk.bf16.vlgmr.msrb.gmra.mxu3 %vm204_vm0, %v763_v23  ;;  %v1097_v23 = vperm.slane %v1042_v50, 5 }
  0x4a   :  { %756 = vmatmul.msk.bf16.gmra.mxu0 %vm204_vm0, %v764_v49  ;;  %758 = vmatmul.msk.bf16.gmra.mxu1 %vm204_vm0, %v764_v49 }
  0x4b   :  { %760 = vmatmul.msk.bf16.gmra.mxu2 %vm204_vm0, %v764_v49 }
  0x4c   :  { %762 = vmatmul.msk.bf16.gmra.mxu3 %vm204_vm0, %v764_v49 }
  0x97   :  { %v220_v53 = vpop.f32.mrf.mxu0  ;;  %v239_v55 = vpop.f32.mrf.mxu1 }
  0x98   :  { %v1046_v54 = vadd.f32 %v220_v53, %v98_v51  ;;  %v1048_v56 = vadd.f32 %v239_v55, %v99_v52 }
  0x9a   :  { %592 = vst [vmem:[#allocation10] sm:$0xff] %v1046_v54  ;;  %v367_v19 = vmax.f32 %v1046_v54, %v1048_v56 }
  0x9b   :  { %593 = vst [vmem:[#allocation10 + $0x8] sm:$0xff] %v1048_v56 }
  0x9e   :  { %v258_v59 = vpop.f32.mrf.mxu2 }
  0x9f   :  { %v1054_v60 = vadd.f32 %v258_v59, %v100_v57  ;;  %v277_v61 = vpop.f32.mrf.mxu3  ;;  %v222_v62 = vpop.f32.mrf.mxu0 }
  0xa0   :  { %v1056_v63 = vadd.f32 %v277_v61, %v101_v58  ;;  %v1058_v0 = vadd.f32 %v222_v62, %v98_v51  ;;  %v241_v1 = vpop.f32.mrf.mxu1 }
  0xa1   :  { %594 = vst [vmem:[#allocation10 + $0x10] sm:$0xff] %v1054_v60  ;;  %v1061_v2 = vadd.f32 %v241_v1, %v99_v52  ;;  %v368_v21 = vmax.f32 %v367_v19, %v1054_v60 }
  0xa2   :  { %595 = vst [vmem:[#allocation10 + $0x18] sm:$0xff] %v1056_v63 }
  0xa3   :  { %600 = vst [vmem:[#allocation10 + $0x40] sm:$0xff] %v1058_v0  ;;  %v369_v30 = vmax.f32 %v368_v21, %v1056_v63  ;;  %v376_v32 = vmax.f32 %v1058_v0, %v1061_v2 }
  0xa4   :  { %601 = vst [vmem:[#allocation10 + $0x48] sm:$0xff] %v1061_v2 }
  0xa6   :  { %v260_v3 = vpop.f32.mrf.mxu2 }
  0xa7   :  { %v1066_v4 = vadd.f32 %v260_v3, %v100_v57  ;;  %v279_v5 = vpop.f32.mrf.mxu3  ;;  %v225_v6 = vpop.f32.mrf.mxu0 }
  0xa8   :  { %v1068_v7 = vadd.f32 %v279_v5, %v101_v58  ;;  %v1070_v8 = vadd.f32 %v225_v6, %v98_v51  ;;  %v244_v9 = vpop.f32.mrf.mxu1 }
  0xa9   :  { %602 = vst [vmem:[#allocation10 + $0x50] sm:$0xff] %v1066_v4  ;;  %v1074_v10 = vadd.f32 %v244_v9, %v99_v52  ;;  %v377_v36 = vmax.f32 %v376_v32, %v1066_v4 }
  0xaa   :  { %603 = vst [vmem:[#allocation10 + $0x58] sm:$0xff] %v1068_v7 }
  0xab   :  { %608 = vst [vmem:[#allocation10 + $0x80] sm:$0xff] %v1070_v8  ;;  %v378_v46 = vmax.f32 %v377_v36, %v1068_v7  ;;  %v385_v49 = vmax.f32 %v1070_v8, %v1074_v10 }
  0xac   :  { %609 = vst [vmem:[#allocation10 + $0x88] sm:$0xff] %v1074_v10 }
  0xae   :  { %v263_v11 = vpop.f32.mrf.mxu2 }
  0xaf   :  { %v1078_v12 = vadd.f32 %v263_v11, %v100_v57  ;;  %v282_v13 = vpop.f32.mrf.mxu3  ;;  %v227_v14 = vpop.f32.mrf.mxu0 }
  0xb0   :  { %v1080_v15 = vadd.f32 %v282_v13, %v101_v58  ;;  %v1082_v16 = vadd.f32 %v227_v14, %v98_v51  ;;  %v246_v17 = vpop.f32.mrf.mxu1 }
  0xb1   :  { %610 = vst [vmem:[#allocation10 + $0x90] sm:$0xff] %v1078_v12  ;;  %v1085_v18 = vadd.f32 %v246_v17, %v99_v52  ;;  %v386_v52 = vmax.f32 %v385_v49, %v1078_v12  ;;  %v987_v49 = vmov 0.0  }
  0xb2   :  { %611 = vst [vmem:[#allocation10 + $0x98] sm:$0xff] %v1080_v15 }
  0xb3   :  { %616 = vst [vmem:[#allocation10 + $0xc0] sm:$0xff] %v1082_v16  ;;  %v387_v3 = vmax.f32 %v386_v52, %v1080_v15  ;;  %v394_v9 = vmax.f32 %v1082_v16, %v1085_v18  ;;  %v1222_v52 = vld [vmem:[#allocation2 + $0x8] sm:$0xff] }
  0xb4   :  { %617 = vst [vmem:[#allocation10 + $0xc8] sm:$0xff] %v1085_v18 }
  0xb5   :  { %72 = vst.msk [vmem:[#allocation3] sm:$0xff] %vm67_vm1, %v987_v49 }
  0xb6   :  { %v265_v22 = vpop.f32.mrf.mxu2  ;;  %73 = vst.msk [vmem:[#allocation3 + $0x8] sm:$0xff] %vm67_vm1, %v987_v49 }
  0xb7   :  { %v1099_v24 = vadd.f32 %v265_v22, %v100_v57  ;;  %v284_v25 = vpop.f32.mrf.mxu3  ;;  %v296_v26 = vpop.f32.mrf.mxu0  ;;  %74 = vst.msk [vmem:[#allocation3 + $0x10] sm:$0xff] %vm67_vm1, %v987_v49 }
  0xb8   :  { %v1101_v27 = vadd.f32 %v284_v25, %v101_v58  ;;  %v1104_v28 = vadd.f32 %v296_v26, %v1093_v20  ;;  %v315_v29 = vpop.f32.mrf.mxu1  ;;  %75 = vst.msk [vmem:[#allocation3 + $0x18] sm:$0xff] %vm67_vm1, %v987_v49 }
  0xb9   :  { %618 = vst [vmem:[#allocation10 + $0xd0] sm:$0xff] %v1099_v24  ;;  %v1110_v31 = vadd.f32 %v315_v29, %v1097_v23  ;;  %v395_v14 = vmax.f32 %v394_v9, %v1099_v24  ;;  %v1242_v9 = vld [vmem:[#allocation2 + $0x18] sm:$0xff] }
  0xba   :  { %619 = vst [vmem:[#allocation10 + $0xd8] sm:$0xff] %v1101_v27  ;;  %v370_v33 = vmax.f32 %v369_v30, %v1104_v28 }
  0xbb   :  { %596 = vst [vmem:[#allocation10 + $0x20] sm:$0xff] %v1104_v28  ;;  %v396_v32 = vmax.f32 %v395_v14, %v1101_v27 }
  0xbc   :  { %597 = vst [vmem:[#allocation10 + $0x28] sm:$0xff] %v1110_v31  ;;  %v371_v42 = vmax.f32 %v370_v33, %v1110_v31 }
  0xbe   :  { %v334_v37 = vpop.f32.mrf.mxu2 }
  0xbf   :  { %v1126_v39 = vadd.f32 %v334_v37, %v1117_v34  ;;  %v353_v40 = vpop.f32.mrf.mxu3  ;;  %v298_v41 = vpop.f32.mrf.mxu0 }
  0xc0   :  { %v1131_v43 = vadd.f32 %v353_v40, %v1121_v35  ;;  %v1134_v44 = vadd.f32 %v298_v41, %v1093_v20  ;;  %v317_v45 = vpop.f32.mrf.mxu1 }
  0xc1   :  { %598 = vst [vmem:[#allocation10 + $0x30] sm:$0xff] %v1126_v39  ;;  %v1140_v47 = vadd.f32 %v317_v45, %v1097_v23  ;;  %v372_v48 = vmax.f32 %v371_v42, %v1126_v39 }
  0xc2   :  { %599 = vst [vmem:[#allocation10 + $0x38] sm:$0xff] %v1131_v43  ;;  %v379_v50 = vmax.f32 %v378_v46, %v1134_v44 }
  0xc3   :  { %604 = vst [vmem:[#allocation10 + $0x60] sm:$0xff] %v1134_v44  ;;  %v373_v51 = vmax.f32 %v372_v48, %v1131_v43  ;;  %v986_v48 = vmov 0  }
  0xc4   :  { %605 = vst [vmem:[#allocation10 + $0x68] sm:$0xff] %v1140_v47  ;;  %v380_v55 = vmax.f32 %v379_v50, %v1140_v47  ;;  %793 = vset.pattern.permute.xlu2 %v986_v48  ;;  %794 = vset.pattern.permute.xlu0 %v986_v48 }
  0xc5   :  { %374 = vmax.xlane.f32.xlu0 %v373_v51  ;;  %795 = vset.pattern.permute.xlu1 %v986_v48 }
  0xc6   :  { %v336_v53 = vpop.f32.mrf.mxu2 }
  0xc7   :  { %v1154_v57 = vadd.f32 %v336_v53, %v1117_v34  ;;  %v355_v58 = vpop.f32.mrf.mxu3  ;;  %v301_v59 = vpop.f32.mrf.mxu0 }
  0xc8   :  { %v1157_v61 = vadd.f32 %v355_v58, %v1121_v35  ;;  %v1160_v62 = vadd.f32 %v301_v59, %v1093_v20  ;;  %v320_v1 = vpop.f32.mrf.mxu1  ;;  %v1232_v59 = vld [vmem:[#allocation2 + $0x10] sm:$0xff] }
  0xc9   :  { %606 = vst [vmem:[#allocation10 + $0x70] sm:$0xff] %v1154_v57  ;;  %v381_v5 = vmax.f32 %v380_v55, %v1154_v57  ;;  %v1167_v6 = vadd.f32 %v320_v1, %v1097_v23 }
  0xca   :  { %607 = vst [vmem:[#allocation10 + $0x78] sm:$0xff] %v1157_v61  ;;  %v388_v11 = vmax.f32 %v387_v3, %v1160_v62 }
  0xcb   :  { %612 = vst [vmem:[#allocation10 + $0xa0] sm:$0xff] %v1160_v62  ;;  %v382_v13 = vmax.f32 %v381_v5, %v1157_v61 }
  0xcc   :  { %613 = vst [vmem:[#allocation10 + $0xa8] sm:$0xff] %v1167_v6  ;;  %v389_v25 = vmax.f32 %v388_v11, %v1167_v6 }
  0xcd   :  { %383 = vmax.xlane.f32.xlu0 %v382_v13 }
  0xce   :  { %v339_v17 = vpop.f32.mrf.mxu2 }
  0xcf   :  { %v1177_v19 = vadd.f32 %v339_v17, %v1117_v34  ;;  %v358_v21 = vpop.f32.mrf.mxu3  ;;  %v303_v22 = vpop.f32.mrf.mxu0 }
  0xd0   :  { %v1181_v26 = vadd.f32 %v358_v21, %v1121_v35  ;;  %v1184_v29 = vadd.f32 %v303_v22, %v1093_v20  ;;  %v322_v30 = vpop.f32.mrf.mxu1 }
  0xd1   :  { %614 = vst [vmem:[#allocation10 + $0xb0] sm:$0xff] %v1177_v19  ;;  %v1189_v33 = vadd.f32 %v322_v30, %v1097_v23  ;;  %v390_v36 = vmax.f32 %v389_v25, %v1177_v19 }
  0xd2   :  { %615 = vst [vmem:[#allocation10 + $0xb8] sm:$0xff] %v1181_v26  ;;  %v397_v37 = vmax.f32 %v396_v32, %v1184_v29 }
  0xd3   :  { %620 = vst [vmem:[#allocation10 + $0xe0] sm:$0xff] %v1184_v29  ;;  %v391_v38 = vmax.f32 %v390_v36, %v1181_v26 }
  0xd4   :  { %621 = vst [vmem:[#allocation10 + $0xe8] sm:$0xff] %v1189_v33  ;;  %v398_v40 = vmax.f32 %v397_v37, %v1189_v33 }
  0xd5   :  { %392 = vmax.xlane.f32.xlu1 %v391_v38 }
  0xd6   :  { %v341_v20 = vpop.f32.mrf.mxu2 }
  0xd7   :  { %v1199_v41 = vadd.f32 %v341_v20, %v1117_v34  ;;  %v360_v23 = vpop.f32.mrf.mxu3  ;;  %v1212_v34 = vld [vmem:[#allocation2] sm:$0xff] }
  0xd8   :  { %v1202_v42 = vadd.f32 %v360_v23, %v1121_v35 }
  0xd9   :  { %622 = vst [vmem:[#allocation10 + $0xf0] sm:$0xff] %v1199_v41  ;;  %v399_v45 = vmax.f32 %v398_v40, %v1199_v41 }
  0xda   :  { %623 = vst [vmem:[#allocation10 + $0xf8] sm:$0xff] %v1202_v42 }
  0xdb   :  { %v400_v46 = vmax.f32 %v399_v45, %v1202_v42  ;;  %663 = dma.vmem_to_hbm [thread:$0]  %s656_s9, 4096, %s658_s7, [#allocation6], %s989_s10, %s989_s10, %s982_s27  }
  0xdd   :  { %401 = vmax.xlane.f32.xlu1 %v400_v46 }
 0x138   :  { %v375_v35 = vpop.xlane.xlu0 %374 }
 0x139   :  { %v1215_v50 = vmax.f32 %v1212_v34, %v375_v35 }
 0x13b   :  { %v411_v51 = vsub.f32 %v1212_v34, %v1215_v50  ;;  %588 = vst.msk [vmem:[#allocation2] sm:$0xff] %vm67_vm1, %v1215_v50  ;;  %429 = vperm.xlu2 %793, %v1215_v50  }
 0x140   :  { %v384_v53 = vpop.xlane.xlu0 %383 }
 0x141   :  { %v1225_v55 = vmax.f32 %v1222_v52, %v384_v53 }
 0x143   :  { %v412_v58 = vsub.f32 %v1222_v52, %v1225_v55  ;;  %589 = vst.msk [vmem:[#allocation2 + $0x8] sm:$0xff] %vm67_vm1, %v1225_v55  ;;  %434 = vperm.xlu2 %793, %v1225_v55   ;;  %v627_v55 = vld [vmem:[#allocation2] sm:$0xff] }
 0x148   :  { %v393_v1 = vpop.xlane.xlu1 %392 }
 0x149   :  { %v1235_v3 = vmax.f32 %v1232_v59, %v393_v1 }
 0x14b   :  { %v413_v5 = vsub.f32 %v1232_v59, %v1235_v3  ;;  %590 = vst.msk [vmem:[#allocation2 + $0x10] sm:$0xff] %vm67_vm1, %v1235_v3  ;;  %439 = vperm.xlu0 %794, %v1235_v3  }
 0x150   :  { %v402_v11 = vpop.xlane.xlu1 %401 }
 0x151   :  { %v1245_v13 = vmax.f32 %v1242_v9, %v402_v11 }
 0x153   :  { %v414_v14 = vsub.f32 %v1242_v9, %v1245_v13  ;;  %591 = vst.msk [vmem:[#allocation2 + $0x18] sm:$0xff] %vm67_vm1, %v1245_v13  ;;  %444 = vperm.xlu1 %795, %v1245_v13  }
 0x195   :  { %v430_v17 = vpop.permute.xlu2 %429 }
 0x196   :  { %v447_v21 = vsub.f32 %v1046_v54, %v430_v17  ;;  %v448_v22 = vsub.f32 %v1048_v56, %v430_v17  ;;  %v449_v25 = vsub.f32 %v1054_v60, %v430_v17  ;;  %v450_v30 = vsub.f32 %v1056_v63, %v430_v17 }
 0x197   :  { %v451_v37 = vsub.f32 %v1104_v28, %v430_v17  ;;  %v452_v38 = vsub.f32 %v1110_v31, %v430_v17  ;;  %v453_v23 = vsub.f32 %v1126_v39, %v430_v17  ;;  %v454_v46 = vsub.f32 %v1131_v43, %v430_v17 }
 0x198   :  { %v479_v32 = vmul.f32 1.442695, %v447_v21  ;;  %v481_v36 = vmul.f32 1.442695, %v448_v22  ;;  %v483_v20 = vmul.f32 1.442695, %v449_v25 }
 0x199   :  { %v485_v40 = vmul.f32 1.442695, %v450_v30  ;;  %v487_v45 = vmul.f32 1.442695, %v451_v37  ;;  %v489_v56 = vmul.f32 1.442695, %v452_v38 }
 0x19a   :  { %796 = vpow2.f32 %v479_v32  ;;  %v491_v39 = vmul.f32 1.442695, %v453_v23 }
 0x19b   :  { %798 = vpow2.f32 %v481_v36 }
 0x19c   :  { %800 = vpow2.f32 %v483_v20 }
 0x19d   :  { %v435_v54 = vpop.permute.xlu2 %434  ;;  %802 = vpow2.f32 %v485_v40 }
 0x19e   :  { %v455_v60 = vsub.f32 %v1058_v0, %v435_v54  ;;  %v456_v63 = vsub.f32 %v1061_v2, %v435_v54  ;;  %v457_v28 = vsub.f32 %v1066_v4, %v435_v54  ;;  %v458_v31 = vsub.f32 %v1068_v7, %v435_v54 }
 0x19f   :  { %804 = vpow2.f32 %v487_v45  ;;  %v459_v1 = vsub.f32 %v1134_v44, %v435_v54  ;;  %v493_v0 = vmul.f32 1.442695, %v454_v46  ;;  %v460_v43 = vsub.f32 %v1140_v47, %v435_v54 }
 0x1a0   :  { %v797_v48 = vpop.eup %796  ;;  %v495_v49 = vmul.f32 1.442695, %v455_v60  ;;  %v497_v35 = vmul.f32 1.442695, %v456_v63  ;;  %806 = vpow2.f32 %v489_v56  ;;  %v499_v11 = vmul.f32 1.442695, %v457_v28 }
 0x1a1   :  { %v799_v53 = vpop.eup %798  ;;  %v501_v4 = vmul.f32 1.442695, %v458_v31  ;;  %v461_v22 = vsub.f32 %v1154_v57, %v435_v54  ;;  %v503_v25 = vmul.f32 1.442695, %v459_v1  ;;  %v462_v36 = vsub.f32 %v1157_v61, %v435_v54 }
 0x1a2   :  { %v543_v21 = vadd.f32 %v799_v53, %v797_v48  ;;  %808 = vpow2.f32 %v495_v49  ;;  %v801_v2 = vpop.eup %800  ;;  %v505_v37 = vmul.f32 1.442695, %v460_v43 }
 0x1a3   :  { %810 = vpow2.f32 %v497_v35  ;;  %v803_v17 = vpop.eup %802  ;;  %v507_v40 = vmul.f32 1.442695, %v461_v22  ;;  %v509_v57 = vmul.f32 1.442695, %v462_v36 }
 0x1a4   :  { %812 = vpow2.f32 %v491_v39  ;;  %v544_v7 = vadd.f32 %v801_v2, %v543_v21 }
 0x1a5   :  { %814 = vpow2.f32 %v499_v11  ;;  %v805_v30 = vpop.eup %804 }
 0x1a6   :  { %816 = vpow2.f32 %v493_v0  ;;  %v545_v32 = vadd.f32 %v803_v17, %v544_v7  ;;  %v807_v44 = vpop.eup %806 }
 0x1a7   :  { %818 = vpow2.f32 %v501_v4 }
 0x1a8   :  { %v809_v38 = vpop.eup %808  ;;  %v546_v20 = vadd.f32 %v805_v30, %v545_v32  ;;  %820 = vpow2.f32 %v503_v25 }
 0x1a9   :  { %v811_v47 = vpop.eup %810  ;;  %822 = vpow2.f32 %v505_v37 }
 0x1aa   :  { %v813_v23 = vpop.eup %812  ;;  %v547_v45 = vadd.f32 %v807_v44, %v546_v20  ;;  %v552_v56 = vadd.f32 %v811_v47, %v809_v38  ;;  %824 = vpow2.f32 %v507_v40 }
 0x1ab   :  { %v815_v60 = vpop.eup %814  ;;  %826 = vpow2.f32 %v509_v57 }
 0x1ac   :  { %v817_v63 = vpop.eup %816  ;;  %v548_v46 = vadd.f32 %v813_v23, %v547_v45  ;;  %v553_v28 = vadd.f32 %v815_v60, %v552_v56 }
 0x1ad   :  { %v819_v31 = vpop.eup %818 }
 0x1ae   :  { %v549_v48 = vadd.f32 %v817_v63, %v548_v46  ;;  %v554_v61 = vadd.f32 %v819_v31, %v553_v28  ;;  %v821_v54 = vpop.eup %820 }
 0x1af   :  { %v823_v35 = vpop.eup %822 }
 0x1b0   :  { %550 = vadd.xlane.f32.xlu2 %v549_v48  ;;  %v555_v49 = vadd.f32 %v821_v54, %v554_v61  ;;  %v825_v53 = vpop.eup %824 }
 0x1b1   :  { %v827_v11 = vpop.eup %826 }
 0x1b2   :  { %v556_v39 = vadd.f32 %v823_v35, %v555_v49 }
 0x1b4   :  { %v557_v1 = vadd.f32 %v825_v53, %v556_v39 }
 0x1b6   :  { %v558_v0 = vadd.f32 %v827_v11, %v557_v1 }
 0x1b8   :  { %559 = vadd.xlane.f32.xlu1 %v558_v0 }
 0x1bd   :  { %v440_v21 = vpop.permute.xlu0 %439 }
 0x1be   :  { %v463_v2 = vsub.f32 %v1070_v8, %v440_v21  ;;  %v464_v43 = vsub.f32 %v1074_v10, %v440_v21  ;;  %v465_v4 = vsub.f32 %v1078_v12, %v440_v21  ;;  %v466_v7 = vsub.f32 %v1080_v15, %v440_v21 }
 0x1bf   :  { %v467_v25 = vsub.f32 %v1160_v62, %v440_v21  ;;  %v468_v30 = vsub.f32 %v1167_v6, %v440_v21  ;;  %v469_v36 = vsub.f32 %v1177_v19, %v440_v21  ;;  %v470_v38 = vsub.f32 %v1181_v26, %v440_v21 }
 0x1c0   :  { %v511_v17 = vmul.f32 1.442695, %v463_v2  ;;  %v513_v22 = vmul.f32 1.442695, %v464_v43  ;;  %v515_v32 = vmul.f32 1.442695, %v465_v4 }
 0x1c1   :  { %v517_v44 = vmul.f32 1.442695, %v466_v7  ;;  %v519_v37 = vmul.f32 1.442695, %v467_v25  ;;  %v521_v10 = vmul.f32 1.442695, %v468_v30 }
 0x1c2   :  { %828 = vpow2.f32 %v511_v17  ;;  %v523_v19 = vmul.f32 1.442695, %v469_v36 }
 0x1c3   :  { %830 = vpow2.f32 %v513_v22 }
 0x1c4   :  { %832 = vpow2.f32 %v515_v32 }
 0x1c5   :  { %v445_v8 = vpop.permute.xlu1 %444  ;;  %834 = vpow2.f32 %v517_v44 }
 0x1c6   :  { %v471_v12 = vsub.f32 %v1082_v16, %v445_v8  ;;  %v472_v15 = vsub.f32 %v1085_v18, %v445_v8  ;;  %v473_v62 = vsub.f32 %v1099_v24, %v445_v8  ;;  %v474_v6 = vsub.f32 %v1101_v27, %v445_v8 }
 0x1c7   :  { %836 = vpow2.f32 %v519_v37  ;;  %v475_v45 = vsub.f32 %v1184_v29, %v445_v8  ;;  %v525_v16 = vmul.f32 1.442695, %v470_v38  ;;  %v476_v26 = vsub.f32 %v1189_v33, %v445_v8 }
 0x1c8   :  { %v829_v20 = vpop.eup %828  ;;  %v527_v47 = vmul.f32 1.442695, %v471_v12  ;;  %v529_v40 = vmul.f32 1.442695, %v472_v15  ;;  %838 = vpow2.f32 %v521_v10  ;;  %v531_v56 = vmul.f32 1.442695, %v473_v62 }
 0x1c9   :  { %v831_v23 = vpop.eup %830  ;;  %v533_v24 = vmul.f32 1.442695, %v474_v6  ;;  %v477_v63 = vsub.f32 %v1199_v41, %v445_v8  ;;  %v535_v46 = vmul.f32 1.442695, %v475_v45  ;;  %v478_v48 = vsub.f32 %v1202_v42, %v445_v8  ;;  %v407_v12 = vld [vmem:[#allocation3] sm:$0xff] }
 0x1ca   :  { %v561_v60 = vadd.f32 %v831_v23, %v829_v20  ;;  %840 = vpow2.f32 %v527_v47  ;;  %v833_v18 = vpop.eup %832  ;;  %v537_v61 = vmul.f32 1.442695, %v476_v26  ;;  %v415_v37 = vmul.f32 1.442695, %v411_v51  ;;  %v408_v20 = vld [vmem:[#allocation3 + $0x8] sm:$0xff] }
 0x1cb   :  { %842 = vpow2.f32 %v529_v40  ;;  %v835_v57 = vpop.eup %834  ;;  %v539_v35 = vmul.f32 1.442695, %v477_v63  ;;  %v541_v41 = vmul.f32 1.442695, %v478_v48  ;;  %v417_v8 = vmul.f32 1.442695, %v412_v58 }
 0x1cc   :  { %844 = vpow2.f32 %v523_v19  ;;  %v562_v27 = vadd.f32 %v833_v18, %v561_v60  ;;  %v419_v45 = vmul.f32 1.442695, %v413_v5  ;;  %v421_v18 = vmul.f32 1.442695, %v414_v14  ;;  %v410_v5 = vld [vmem:[#allocation3 + $0x18] sm:$0xff]  ;;  %v629_v14 = vld [vmem:[#allocation2 + $0x10] sm:$0xff] }
 0x1cd   :  { %846 = vpow2.f32 %v531_v56  ;;  %v837_v28 = vpop.eup %836 }
 0x1ce   :  { %848 = vpow2.f32 %v525_v16  ;;  %v563_v31 = vadd.f32 %v835_v57, %v562_v27  ;;  %v839_v29 = vpop.eup %838  ;;  %v628_v16 = vld [vmem:[#allocation2 + $0x8] sm:$0xff] }
 0x1cf   :  { %850 = vpow2.f32 %v533_v24  ;;  %v409_v24 = vld [vmem:[#allocation3 + $0x10] sm:$0xff] }
 0x1d0   :  { %v841_v54 = vpop.eup %840  ;;  %v564_v49 = vadd.f32 %v837_v28, %v563_v31  ;;  %852 = vpow2.f32 %v535_v46 }
 0x1d1   :  { %v843_v33 = vpop.eup %842  ;;  %854 = vpow2.f32 %v537_v61 }
 0x1d2   :  { %v845_v39 = vpop.eup %844  ;;  %v565_v53 = vadd.f32 %v839_v29, %v564_v49  ;;  %v570_v1 = vadd.f32 %v843_v33, %v841_v54  ;;  %856 = vpow2.f32 %v539_v35  ;;  %v630_v49 = vld [vmem:[#allocation2 + $0x18] sm:$0xff] }
 0x1d3   :  { %v847_v11 = vpop.eup %846  ;;  %858 = vpow2.f32 %v541_v41 }
 0x1d4   :  { %v849_v0 = vpop.eup %848  ;;  %v566_v21 = vadd.f32 %v845_v39, %v565_v53  ;;  %v571_v2 = vadd.f32 %v847_v11, %v570_v1  ;;  %860 = vpow2.f32 %v415_v37 }
 0x1d5   :  { %v851_v43 = vpop.eup %850  ;;  %862 = vpow2.f32 %v417_v8 }
 0x1d6   :  { %v567_v4 = vadd.f32 %v849_v0, %v566_v21  ;;  %v572_v42 = vadd.f32 %v851_v43, %v571_v2  ;;  %v853_v7 = vpop.eup %852 }
 0x1d7   :  { %v855_v22 = vpop.eup %854 }
 0x1d8   :  { %568 = vadd.xlane.f32.xlu0 %v567_v4  ;;  %v573_v17 = vadd.f32 %v853_v7, %v572_v42  ;;  %v857_v30 = vpop.eup %856 }
 0x1d9   :  { %v859_v44 = vpop.eup %858 }
 0x1da   :  { %v574_v25 = vadd.f32 %v855_v22, %v573_v17  ;;  %v861_v10 = vpop.eup %860 }
 0x1db   :  { %v423_v15 = vmul.f32 %v861_v10, %v407_v12  ;;  %v863_v6 = vpop.eup %862 }
 0x1dc   :  { %v575_v32 = vadd.f32 %v857_v30, %v574_v25  ;;  %v424_v47 = vmul.f32 %v863_v6, %v408_v20 }
 0x1de   :  { %v576_v36 = vadd.f32 %v859_v44, %v575_v32 }
 0x1e0   :  { %577 = vadd.xlane.f32.xlu2 %v576_v36 }
 0x223   :  { %v551_v38 = vpop.xlane.xlu2 %550 }
 0x224   :  { %v579_v62 = vadd.f32 %v551_v38, %v423_v15 }
 0x226   :  { %584 = vst.msk [vmem:[#allocation3] sm:$0xff] %vm67_vm1, %v579_v62 }
 0x22b   :  { %v560_v40 = vpop.xlane.xlu1 %559 }
 0x22c   :  { %v580_v19 = vadd.f32 %v560_v40, %v424_v47 }
 0x22d   :  { %v631_v34 = vld [vmem:[#allocation3] sm:$0xff] }
 0x22e   :  { %864 = vlog2.f32 %v631_v34  ;;  %585 = vst.msk [vmem:[#allocation3 + $0x8] sm:$0xff] %vm67_vm1, %v580_v19 }
 0x234   :  { %v865_v50 = vpop.eup %864 }
 0x235   :  { %v636_v51 = vmul.f32 0.6931472, %v865_v50  ;;  %v632_v52 = vld [vmem:[#allocation3 + $0x8] sm:$0xff] }
 0x236   :  { %866 = vlog2.f32 %v632_v52 }
 0x237   :  { %v643_v58 = vadd.f32 %v636_v51, %v627_v55  ;;  %868 = vpow2.f32 %v419_v45 }
 0x238   :  { %870 = vpow2.f32 %v421_v18 }
 0x239   :  { %647 = vst.msk [vmem:[%s1324_s4] sm:$0xff] %vm67_vm1, %v643_v58 }
 0x23c   :  { %v867_v23 = vpop.eup %866 }
 0x23d   :  { %v638_v56 = vmul.f32 0.6931472, %v867_v23  ;;  %v869_v26 = vpop.eup %868 }
 0x23e   :  { %v425_v27 = vmul.f32 %v869_v26, %v409_v24  ;;  %v871_v3 = vpop.eup %870 }
 0x23f   :  { %v644_v60 = vadd.f32 %v638_v56, %v628_v16  ;;  %v426_v63 = vmul.f32 %v871_v3, %v410_v5 }
 0x241   :  { %648 = vst.msk [vmem:[%s1324_s4 + $0x8] sm:$0xff] %vm67_vm1, %v644_v60 }
 0x24b   :  { %v569_v57 = vpop.xlane.xlu0 %568 }
 0x24c   :  { %v581_v59 = vadd.f32 %v569_v57, %v425_v27 }
 0x24e   :  { %586 = vst.msk [vmem:[#allocation3 + $0x10] sm:$0xff] %vm67_vm1, %v581_v59 }
 0x253   :  { %v578_v46 = vpop.xlane.xlu2 %577 }
 0x254   :  { %v582_v28 = vadd.f32 %v578_v46, %v426_v63 }
 0x255   :  { %v633_v31 = vld [vmem:[#allocation3 + $0x10] sm:$0xff] }
 0x256   :  { %872 = vlog2.f32 %v633_v31  ;;  %587 = vst.msk [vmem:[#allocation3 + $0x18] sm:$0xff] %vm67_vm1, %v582_v28 }
 0x25c   :  { %v873_v29 = vpop.eup %872 }
 0x25d   :  { %v640_v9 = vmul.f32 0.6931472, %v873_v29  ;;  %v634_v13 = vld [vmem:[#allocation3 + $0x18] sm:$0xff] }
 0x25e   :  { %874 = vlog2.f32 %v634_v13 }
 0x25f   :  { %v645_v48 = vadd.f32 %v640_v9, %v629_v14 }
 0x261   :  { %649 = vst.msk [vmem:[%s1324_s4 + $0x10] sm:$0xff] %vm67_vm1, %v645_v48 }
 0x264   :  { %v875_v61 = vpop.eup %874 }
 0x265   :  { %v642_v54 = vmul.f32 0.6931472, %v875_v61 }
 0x267   :  { %v646_v33 = vadd.f32 %v642_v54, %v630_v49 }
 0x269   :  { %650 = vst.msk [vmem:[%s1324_s4 + $0x18] sm:$0xff] %vm67_vm1, %v646_v33 }
 0x26a   :  { %976 = dma.done.wait [#allocation6], 4096  }
 0x26b   :  { %977 = vsyncadd [#allocation6], 4294963200 }
 0x26c   :  { %672 = vsyncpa [#allocation5], 1 }
 0x26d   :  { %673 = vsyncpa [#allocation8], 1 }
 0x26e   :  { %674 = vsyncpa [#allocation6], 1 }

</bundles_post_ra>
